<compile_context>
chip_gen: v5e
topology: v5e:2x2
jax: 0.10.0
libtpu: 0.0.40
codegen_flags: <defaults>
</compile_context>

<pallas_src>
import functools
import math

import jax
import jax.numpy as jnp
from jax.experimental import pallas as pl
from jax.experimental.pallas import tpu as pltpu


def _ntxent_kernel(zq_ref, z_ref, zp_ref, loss_ref, *, inv_tau, eps,
                   use_bf16_matmul):
    """One row tile of the NT-Xent loss.

    zq_ref:   (tq, d) query rows for this grid step
    z_ref:    (n, d)  full concatenated batch (resident across the grid)
    zp_ref:   (tq, d) positive-partner rows (shifted view of the same array)
    loss_ref: (tq, 1) per-row loss output
    """

    def l2norm(x):
        # F.normalize(x, dim=1): x / max(||x||, 1e-12)
        #   == x * rsqrt(max(||x||^2, 1e-24))   (one EUP op + one VPU mul)
        ss = jnp.sum(x * x, axis=-1, keepdims=True)
        return x * jax.lax.rsqrt(jnp.maximum(ss, 1e-24))

    zn_q = l2norm(zq_ref[...].astype(jnp.float32))          # (tq, d) unit rows
    zq = zn_q * inv_tau                                     # fold 1/tau into LHS
    zk = l2norm(z_ref[...].astype(jnp.float32))             # (n, d) unit rows
    zp = l2norm(zp_ref[...].astype(jnp.float32))            # (tq, d) partners

    if use_bf16_matmul:
        # Only pays off at large d (MXU peak rate, half operand footprint);
        # changes numerics beyond ~1e-5, so gated behind a flag.
        lhs, rhs = zq.astype(jnp.bfloat16), zk.astype(jnp.bfloat16)
    else:
        lhs, rhs = zq, zk

    # (tq, n) similarity tile, already divided by tau.  Contract the last
    # (lane) dim of BOTH operands -> feeds the MXU without materializing z.T.
    # TODO(synk): on v5e, check with pl.lower_as_mlir that this (1,1)
    # contraction lowers without an explicit vxpose of the RHS.
    sim = jax.lax.dot_general(
        lhs, rhs,
        dimension_numbers=(((1,), (1,)), ((), ())),
        preferred_element_type=jnp.float32)

    # Self-similarity (the diagonal of the full matrix restricted to this row
    # tile) and positive-pair similarity as rowwise dots (VPU/XLU filler).
    sim_self = jnp.sum(zq * zn_q, axis=-1, keepdims=True)   # (tq, 1) ~ inv_tau
    sim_pos = jnp.sum(zq * zp, axis=-1, keepdims=True)      # (tq, 1)

    # neg_mask = ones - eye  ->  subtract the diagonal term instead of building
    # a (tq, n) mask + select.  exp + row-sum fused in one expression.
    neg_sum = (jnp.sum(jnp.exp(sim), axis=-1, keepdims=True)
               - jnp.exp(sim_self))                          # (tq, 1)

    # -log(exp(sim_pos) / (neg_sum + eps)) == log(neg_sum + eps) - sim_pos
    loss_ref[...] = jnp.log(neg_sum + eps) - sim_pos


def ntxent_loss(zi, zj, *, tau=1.0, eps=1e-8, tq=None, use_bf16_matmul=False):
    """Pallas NTXentLoss forward.  zi, zj: (bs, d)."""
    bs, d = zi.shape
    n = 2 * bs

    # Concatenate at the XLA level so the kernel never pays a sublane concat.
    z = jnp.concatenate([zi, zj], axis=0)                    # (n, d)

    if tq is None:
        # Largest power-of-two divisor of bs, capped at 256 (MXU-width aligned
        # on v6e/v7x; 128 is enough on v5e).  On v7x (64 MiB physical VMEM)
        # keep tq such that a few (tq, n) f32 slabs fit the scoped budget.
        tq = math.gcd(bs, 256)
    assert bs % tq == 0 and n % tq == 0, (bs, n, tq)
    # TODO(synk): pad bs up to a multiple of 8 when needed; the (tq, d) blocks
    # want the sublane dim to be a multiple of 8 (or equal to n).
    num_tiles = n // tq
    shift = bs // tq  # positive partner of row tile i is tile (i+shift)%num_tiles

    kernel = functools.partial(
        _ntxent_kernel, inv_tau=1.0 / float(tau), eps=float(eps),
        use_bf16_matmul=use_bf16_matmul)

    per_row = pl.pallas_call(
        kernel,
        out_shape=jax.ShapeDtypeStruct((n, 1), jnp.float32),
        grid=(num_tiles,),
        in_specs=[
            # Query row tile for this grid step.
            pl.BlockSpec((tq, d), lambda i: (i, 0)),
            # Full z, resident across the grid: constant index_map + a single
            # buffer (double-buffering a never-changing block wastes n*d*4 B).
            pl.BlockSpec((n, d), lambda i: (0, 0),
                         pipeline_mode=pl.Buffered(1)),
            # Positive-partner row tile: shifted view of the same array,
            # replacing the previous in-kernel pltpu.roll.
            pl.BlockSpec((tq, d), lambda i: ((i + shift) % num_tiles, 0)),
        ],
        out_specs=pl.BlockSpec((tq, 1), lambda i: (i, 0)),
        compiler_params=pltpu.CompilerParams(
            dimension_semantics=("parallel",),
            vmem_limit_bytes=32 * 1024 * 1024),
    )(z, z, z)

    # Finish the mean in the wrapper (per-row losses, no carried accumulator).
    return jnp.mean(per_row)
    # TODO(synk): when many (zi, zj) problems are available, stack them along a
    # leading "parallel" grid axis in one pallas_call; at toy sizes the
    # per-call launch overhead dominates.


def ntxent_loss_ref(zi, zj, *, tau=1.0, eps=1e-8):
    """Pure-JAX reference mirroring the PyTorch forward (exp-domain form)."""
    def l2norm(x):
        nrm = jnp.sqrt(jnp.sum(x * x, axis=-1, keepdims=True))
        return x / jnp.maximum(nrm, 1e-12)

    bs = zi.shape[0]
    z = jnp.concatenate([l2norm(zi), l2norm(zj)], axis=0)
    sim = (z @ z.T) / tau
    n = 2 * bs
    idx = jnp.arange(n)
    sim_pos = sim[idx, (idx + bs) % n]
    exp_sim = jnp.exp(sim)
    neg_sum = jnp.sum(exp_sim * (1.0 - jnp.eye(n)), axis=-1)
    return jnp.mean(-jnp.log(jnp.exp(sim_pos) / (neg_sum + eps)))


if __name__ == "__main__":
    bs, d = 8, 32
    key = jax.random.PRNGKey(0)
    k1, k2 = jax.random.split(key)
    zi = jax.random.normal(k1, (bs, d), dtype=jnp.float32)
    zj = jax.random.normal(k2, (bs, d), dtype=jnp.float32)

    loss = jax.block_until_ready(ntxent_loss(zi, zj, tau=1.0, eps=1e-8))
    ref = jax.block_until_ready(ntxent_loss_ref(zi, zj, tau=1.0, eps=1e-8))

    assert jnp.allclose(loss, ref, rtol=1e-5, atol=1e-5), (loss, ref)
    print("KERNEL_OK")
</pallas_src>

<mosaic_0001>
module attributes {stable_mosaic.version = 11 : i64} {
  func.func @_ntxent_kernel(%arg0: i32, %arg1: memref<8x32xf32, #tpu.memory_space<vmem>>, %arg2: memref<16x32xf32, #tpu.memory_space<vmem>>, %arg3: memref<8x32xf32, #tpu.memory_space<vmem>>, %arg4: memref<8x1xf32, #tpu.memory_space<vmem>>) attributes {dimension_semantics = [#tpu.dimension_semantics<parallel>], iteration_bounds = array<i64: 2>, scalar_prefetch = 0 : i64, scratch_operands = 0 : i64, tpu.core_type = #tpu.core_type<tc>, window_params = [{transform_indices = @transform_0, window_bounds = array<i64: 8, 32>}, {pipeline_mode = #tpu.pipeline_mode<synchronous>, transform_indices = @transform_1, window_bounds = array<i64: 16, 32>}, {transform_indices = @transform_2, window_bounds = array<i64: 8, 32>}, {transform_indices = @transform_3, window_bounds = array<i64: 8, 1>}]} {
    %c0 = arith.constant 0 : index
    %c0_0 = arith.constant 0 : index
    %0 = vector.load %arg1[%c0, %c0_0] : memref<8x32xf32, #tpu.memory_space<vmem>>, vector<8x32xf32>
    %1 = arith.mulf %0, %0 : vector<8x32xf32>
    %cst = arith.constant dense<0.000000e+00> : vector<8xf32>
    %2 = vector.multi_reduction <add>, %1, %cst [1] : vector<8x32xf32> to vector<8xf32>
    %3 = vector.shape_cast %2 : vector<8xf32> to vector<8x1xf32>
    %cst_1 = arith.constant 1.000000e-24 : f32
    %4 = vector.broadcast %cst_1 : f32 to vector<8x1xf32>
    %5 = arith.maximumf %3, %4 : vector<8x1xf32>
    %6 = math.rsqrt %5 : vector<8x1xf32>
    %7 = vector.broadcast %6 : vector<8x1xf32> to vector<8x32xf32>
    %8 = arith.mulf %0, %7 : vector<8x32xf32>
    %cst_2 = arith.constant 1.000000e+00 : f32
    %9 = vector.broadcast %cst_2 : f32 to vector<8x32xf32>
    %10 = arith.mulf %8, %9 : vector<8x32xf32>
    %c0_3 = arith.constant 0 : index
    %c0_4 = arith.constant 0 : index
    %11 = vector.load %arg2[%c0_3, %c0_4] : memref<16x32xf32, #tpu.memory_space<vmem>>, vector<16x32xf32>
    %12 = arith.mulf %11, %11 : vector<16x32xf32>
    %cst_5 = arith.constant dense<0.000000e+00> : vector<16xf32>
    %13 = vector.multi_reduction <add>, %12, %cst_5 [1] : vector<16x32xf32> to vector<16xf32>
    %14 = vector.shape_cast %13 : vector<16xf32> to vector<16x1xf32>
    %cst_6 = arith.constant 1.000000e-24 : f32
    %15 = vector.broadcast %cst_6 : f32 to vector<16x1xf32>
    %16 = arith.maximumf %14, %15 : vector<16x1xf32>
    %17 = math.rsqrt %16 : vector<16x1xf32>
    %18 = vector.broadcast %17 : vector<16x1xf32> to vector<16x32xf32>
    %19 = arith.mulf %11, %18 : vector<16x32xf32>
    %c0_7 = arith.constant 0 : index
    %c0_8 = arith.constant 0 : index
    %20 = vector.load %arg3[%c0_7, %c0_8] : memref<8x32xf32, #tpu.memory_space<vmem>>, vector<8x32xf32>
    %21 = arith.mulf %20, %20 : vector<8x32xf32>
    %cst_9 = arith.constant dense<0.000000e+00> : vector<8xf32>
    %22 = vector.multi_reduction <add>, %21, %cst_9 [1] : vector<8x32xf32> to vector<8xf32>
    %23 = vector.shape_cast %22 : vector<8xf32> to vector<8x1xf32>
    %cst_10 = arith.constant 1.000000e-24 : f32
    %24 = vector.broadcast %cst_10 : f32 to vector<8x1xf32>
    %25 = arith.maximumf %23, %24 : vector<8x1xf32>
    %26 = math.rsqrt %25 : vector<8x1xf32>
    %27 = vector.broadcast %26 : vector<8x1xf32> to vector<8x32xf32>
    %28 = arith.mulf %20, %27 : vector<8x32xf32>
    %cst_11 = arith.constant dense<0.000000e+00> : vector<8x16xf32>
    %29 = tpu.matmul %10, %19, %cst_11 {dimension_numbers = #tpu.dot_dimension_numbers<[1], [1], [0], [0], [0, 0, 1, 0], [], []>} : vector<8x32xf32>, vector<16x32xf32>, vector<8x16xf32> -> vector<8x16xf32>
    %30 = arith.mulf %10, %8 : vector<8x32xf32>
    %cst_12 = arith.constant dense<0.000000e+00> : vector<8xf32>
    %31 = vector.multi_reduction <add>, %30, %cst_12 [1] : vector<8x32xf32> to vector<8xf32>
    %32 = vector.shape_cast %31 : vector<8xf32> to vector<8x1xf32>
    %33 = arith.mulf %10, %28 : vector<8x32xf32>
    %cst_13 = arith.constant dense<0.000000e+00> : vector<8xf32>
    %34 = vector.multi_reduction <add>, %33, %cst_13 [1] : vector<8x32xf32> to vector<8xf32>
    %35 = vector.shape_cast %34 : vector<8xf32> to vector<8x1xf32>
    %36 = math.exp %29 : vector<8x16xf32>
    %cst_14 = arith.constant dense<0.000000e+00> : vector<8xf32>
    %37 = vector.multi_reduction <add>, %36, %cst_14 [1] : vector<8x16xf32> to vector<8xf32>
    %38 = vector.shape_cast %37 : vector<8xf32> to vector<8x1xf32>
    %39 = math.exp %32 : vector<8x1xf32>
    %40 = arith.subf %38, %39 : vector<8x1xf32>
    %cst_15 = arith.constant 9.99999993E-9 : f32
    %41 = vector.broadcast %cst_15 : f32 to vector<8x1xf32>
    %42 = arith.addf %40, %41 : vector<8x1xf32>
    %43 = math.log %42 : vector<8x1xf32>
    %44 = arith.subf %43, %35 : vector<8x1xf32>
    %c0_16 = arith.constant 0 : index
    %c0_17 = arith.constant 0 : index
    %45 = vector.load %arg4[%c0_16, %c0_17] : memref<8x1xf32, #tpu.memory_space<vmem>>, vector<8x1xf32>
    tpu.vector_store %arg4[%c0_16, %c0_17], %44 {strides = array<i32>} : memref<8x1xf32, #tpu.memory_space<vmem>>, vector<8x1xf32>,
    return
  }
  func.func @transform_0(%arg0: i32) -> (i32, i32) {
    %c0_i32 = arith.constant 0 : i32
    %c0_i32_0 = arith.constant 0 : i32
    return %arg0, %c0_i32 : i32, i32
  }
  func.func @transform_1(%arg0: i32) -> (i32, i32) {
    %c0_i32 = arith.constant 0 : i32
    %c0_i32_0 = arith.constant 0 : i32
    %c0_i32_1 = arith.constant 0 : i32
    return %c0_i32, %c0_i32_0 : i32, i32
  }
  func.func @transform_2(%arg0: i32) -> (i32, i32) {
    %c1_i32 = arith.constant 1 : i32
    %0 = arith.addi %arg0, %c1_i32 : i32
    %c2_i32 = arith.constant 2 : i32
    %c0_i32 = arith.constant 0 : i32
    %1 = arith.cmpi eq, %c2_i32, %c0_i32 : i32
    %c1_i32_0 = arith.constant 1 : i32
    %2 = arith.select %1, %c1_i32_0, %c2_i32 : i32
    %3 = arith.remsi %0, %2 : i32
    %c0_i32_1 = arith.constant 0 : i32
    %4 = arith.cmpi ne, %3, %c0_i32_1 : i32
    %c0_i32_2 = arith.constant 0 : i32
    %5 = arith.cmpi slt, %3, %c0_i32_2 : i32
    %c0_i32_3 = arith.constant 0 : i32
    %6 = arith.cmpi slt, %2, %c0_i32_3 : i32
    %7 = arith.xori %5, %6 : i1
    %8 = arith.andi %7, %4 : i1
    %9 = arith.addi %3, %2 : i32
    %10 = arith.select %8, %9, %3 : i32
    %c0_i32_4 = arith.constant 0 : i32
    %c0_i32_5 = arith.constant 0 : i32
    return %10, %c0_i32_4 : i32, i32
  }
  func.func @transform_3(%arg0: i32) -> (i32, i32) {
    %c0_i32 = arith.constant 0 : i32
    %c0_i32_0 = arith.constant 0 : i32
    return %arg0, %c0_i32 : i32, i32
  }
}

</mosaic_0001>

<bundles_post_ra>
// kernel: tpu_custom_call.1
= control target key start
LH: loop header
LB: loop body
LE: loop exit
PB: predicated region body
PF: predicated region fallthrough
CT: control target
= control target key end

     0   :  { %s1030_s0 = inlined_call_operand.hbm [shape: f32[16,32], index: 0, kind: input, shape index: {}]   ;;  %s1031_s1 = inlined_call_operand.hbm [shape: f32[16,32], index: 1, kind: input, shape index: {}]   ;;  %s1032_s2 = inlined_call_operand.hbm [shape: f32[16,32], index: 2, kind: input, shape index: {}]   ;;  %s1033_s3 = inlined_call_operand.vmem [shape: f32[16,1], index: 3, kind: output, shape index: {}]  }
   0x1   :  { %1035 = sst [smem:[#allocation10_spill]] %s1030_s0 }
   0x2   :  { %1036 = sst [smem:[#allocation11_spill]] %s1031_s1 }
   0x3   :  { %8 = vsyncpa [#allocation3], 0 }
   0x4   :  { %10 = vsyncpa [#allocation3 + $0x1], 0 }
   0x5   :  { %11 = vsyncpa [#allocation5], 0  ;;  %s812_s12 = smov 0   ;;  %s814_s13 = smov 0  }
   0x6   :  { %s816_s14 = smov 0   ;;  %s818_s15 = smov 0  }
   0x7   :  { %s820_s16 = smov 0   ;;  %s822_s17 = smov 0  }
   0x8   :  { %s824_s18 = smov 0  }
   0x9 LB: > { %s846_s19 = sadd.s32 4294967295, %s787_s18   ;;  %s849_s20 = sadd.s32 1, %s787_s18   ;;  %s787_s18 = sphi %s824_s18, %s1053_s18   ;;  %s783_s17 = sphi %s822_s17, %s1052_s17   ;;  %s779_s16 = sphi %s820_s16, %s1051_s16   ;;  %s775_s15 = sphi %s818_s15, %s1050_s15   ;;  %s771_s14 = sphi %s816_s14, %s1049_s14   ;;  %s767_s13 = sphi %s814_s13, %s1048_s13   ;;  %s763_s12 = sphi %s812_s12, %s1047_s12  }
   0xa   : > { %s21_s21 = ssub.s32 %s787_s18, %s849_s20  ;;  %s24_s22 = sadd.s32 1, %s783_s17 }
   0xb   : > { %p22_p0 = scmp.eq.s32.totalorder %s21_s21, 0  ;;  %p31_p1 = scmp.ne.s32.totalorder %s783_s17, %s779_s16 }
   0xc   : > { %p32_p2 = scmp.eq.s32.totalorder %s787_s18, 0  ;;  %p37_p3 = scmp.ne.s32.totalorder %s779_s16, %s775_s15 }
   0xd   : > { %s859_s23 = scalar_select %p22_p0, %s783_s17, %s24_s22  }
   0xe   : > { %p863_p4 = por %p32_p2, %p31_p1  ;;  %p38_p5 = scmp.eq.s32.totalorder %s846_s19, 0 }
   0xf   : > { %p1034_p7 = scmp.lt.s32.totalorder %s787_s18, 2  ;;  %s174_s26 = sand.u32 1, %s787_s18  }
  0x10   : > { %p870_p6 = por %p38_p5, %p37_p3  ;;  %s176_s27 = sand.u32 1, %s783_s17  }
  0x11   : > { %s519_s28 = sshll.u32 %s176_s27, 3  ;;  %s520_s29 = sshll.u32 %s787_s18, 3 }
  0x12   : > { %s1039_s0 = sld [smem:[#allocation10_spill]]  ;;  %s178_s6 = scalar_lea.vmem [#allocation2], %s519_s28 }
  0x13   : > { %s186_s7 = sshll.u32 %s178_s6, 4  ;;  %p885_p8 = pnand %p1034_p7, %p863_p4  ;;  %s187_s7 = int_to_ptr.vmem [resolvable:$true] %s186_s7 }
  0x14   : > { %p516_p9 = scmp.ge.s32.totalorder %s787_s18, 1  ;;  %p147_p10 = scmp.lt.s32.totalorder %s787_s18, 3 }
  0x15   : > { %s1041_s1 = sld [smem:[#allocation11_spill]]  ;;  %s894_s21 = scalar_lea.sflag [#allocation3], %s174_s26 }
  0x16   : > { %p635_p12 = pneg %p885_p8 }
  0x18   : > { %s182_s5 = scalar_lea.hbm %s1039_s0, %s520_s29  ;;  %s638_s29 = scalar_lea.hbm %s1039_s0, 16 }
  0x19   : > { %s184_s8 = sshll.u32 %s182_s5, 4  ;;  %s185_s8 = int_to_ptr.hbm [resolvable:$true] %s184_s8 }
  0x1a   : > { %s631_s22 = sshra.s32 %s185_s8, 4  ;;  %s632_s22 = int_to_ptr.hbm [resolvable:$true] %s631_s22 }
  0x1b   : > { %s158_s15 = sshll.u32 %s1041_s1, 4  ;;  %s633_s27 = scalar_lea.hbm %s632_s22, 8  ;;  %s159_s15 = int_to_ptr.hbm [resolvable:$true] %s158_s15 }
  0x1c   : > { %p634_p11 = scmp.ne.s32.totalorder %s632_s22, %s633_s27  ;;  %p639_p1 = scmp.lt.s32.totalorder %s632_s22, %s1039_s0 }
  0x1d   : > { %p640_p3 = scmp.lt.s32.totalorder %s638_s29, %s633_s27 }
  0x1e   : > { %p636_p13 = pnand %p635_p12, %p634_p11 }
  0x1f   : > { %p641_p4 = por %p640_p3, %p639_p1 }
  0x20   : > { %p637_p0 = pneg %p636_p13 }
  0x22   : > { %p642_p7 = pnand %p641_p4, %p637_p0 }
  0x24   : > { %645 = shalt.err (!%p642_p7)
}
  0x25   : > { %551 = dma.hbm_to_vmem [thread:$0]  (!%p885_p8), %s185_s8, 128, %s187_s7, %s894_s21  }
  0x26   : > { %p911_p11 = pnand %p516_p9, %p147_p10  ;;  %s789_s5 = smov [#allocation4]  }
  0x27   : > { %s160_s6 = sshll.u32 %s789_s5, 4  ;;  %s790_s9 = smov 128   ;;  %s161_s6 = int_to_ptr.vmem [resolvable:$true] %s160_s6 }
  0x28   : > { %p544_p7 = pneg %p911_p11  ;;  %s791_s10 = smov 8  }
  0x29   : > { %p69_p8 = scmp.lt.s32.totalorder %s849_s20, 0  ;;  %s70_s7 = ssub.s32 0, %s849_s20 }
  0x2a   : > { %p545_p12 = pnand %p544_p7, %p38_p5  ;;  %s510_s8 = smin.u32 %s70_s7, %s849_s20 }
  0x2b   : > { %s81_s11 = sadd.s32 1, %s849_s20  ;;  %s72_s22 = sand.u32 1, %s510_s8  }
  0x2c   : > { %547 = dma.hbm_to_vmem [thread:$0]  (!%p545_p12), %s159_s15, 256, %s161_s6, [#allocation5], %s790_s9, %s790_s9, %s791_s10  }
  0x2d   : > { %p82_p9 = scmp.lt.s32.totalorder %s81_s11, 0  ;;  %s73_s27 = ssub.s32 0, %s72_s22 }
  0x2e   : > { %s83_s24 = ssub.s32 0, %s81_s11  ;;  %s1055_s27 = smov (!%p69_p8, %s73_s27), %s72_s22 }
  0x2f   : > { %s513_s28 = smin.u32 %s83_s24, %s81_s11  ;;  %s97_s29 = sadd.s32 1, %s771_s14 }
  0x30   : > { %p512_p10 = scmp.lt.s32.totalorder %s1055_s27, 0  ;;  %s79_s30 = sadd.s32 2, %s1055_s27 }
  0x31   : > { %s85_s4 = sand.u32 1, %s513_s28   ;;  %p104_p13 = scmp.ne.s32.totalorder %s771_s14, %s767_s13 }
  0x32   : > { %s1057_s30 = smov (!%p512_p10, %s79_s30), %s1055_s27  ;;  %s86_s15 = ssub.s32 0, %s85_s4 }
  0x33   : > { %p928_p0 = por %p104_p13, %p32_p2  ;;  %s1059_s15 = smov (!%p82_p9, %s86_s15), %s85_s4 }
  0x34   : > { %p110_p1 = scmp.ne.s32.totalorder %s767_s13, %s763_s12  ;;  %s195_s6 = sand.u32 1, %s771_s14  }
  0x35   : > { %p515_p3 = scmp.lt.s32.totalorder %s1059_s15, 0  ;;  %s92_s9 = sadd.s32 2, %s1059_s15 }
  0x36   : > { %p938_p4 = por %p110_p1, %p38_p5  ;;  %s521_s7 = sshll.u32 %s195_s6, 3 }
  0x37   : > { %s1061_s9 = smov (!%p515_p3, %s92_s9), %s1059_s15  ;;  %s525_s8 = sshll.u32 %s1057_s30, 3 }
  0x38   : > { %s94_s22 = ssub.s32 %s1057_s30, %s1061_s9  ;;  %s214_s11 = scalar_lea.hbm %s1032_s2, %s525_s8 }
  0x39   : > { %p95_p2 = scmp.eq.s32.totalorder %s94_s22, 0  ;;  %s216_s12 = sshll.u32 %s214_s11, 4  ;;  %s217_s12 = int_to_ptr.hbm [resolvable:$true] %s216_s12 }
  0x3a   : > { %s197_s28 = scalar_lea.vmem [#allocation6], %s521_s7  ;;  %p1045_p7 = scmp.lt.s32.totalorder %s787_s18, 2 }
  0x3b   : > { %s218_s4 = sshll.u32 %s197_s28, 4  ;;  %s691_s30 = sshra.s32 %s217_s12, 4  ;;  %s219_s4 = int_to_ptr.vmem [resolvable:$true] %s218_s4  ;;  %s692_s30 = int_to_ptr.hbm [resolvable:$true] %s691_s30 }
  0x3c   : > { %s946_s0 = scalar_select %p95_p2, %s771_s14, %s97_s29  }
  0x3d   : > { %p952_p12 = pnand %p1045_p7, %p928_p0  ;;  %s693_s15 = scalar_lea.hbm %s692_s30, 8 }
  0x3e   : > { %p694_p8 = scmp.ne.s32.totalorder %s692_s30, %s693_s15  ;;  %s698_s29 = scalar_lea.hbm %s1032_s2, 16 }
  0x3f   : > { %p695_p9 = pneg %p952_p12  ;;  %p699_p0 = scmp.lt.s32.totalorder %s692_s30, %s1032_s2 }
  0x40   : > { %p700_p1 = scmp.lt.s32.totalorder %s698_s29, %s693_s15 }
  0x41   : > { %p696_p10 = pnand %p695_p9, %p694_p8 }
  0x42   : > { %p701_p3 = por %p700_p1, %p699_p0 }
  0x43   : > { %p697_p13 = pneg %p696_p10 }
  0x45   : > { %p702_p2 = pnand %p701_p3, %p697_p13 }
  0x47   : > { %705 = shalt.err (!%p702_p2)
}
  0x48   : > { %554 = dma.hbm_to_vmem [thread:$0]  (!%p952_p12), %s217_s12, 128, %s219_s4, %s894_s21  }
  0x49   : > { %227 = sbr.rel (%p911_p11) target bundleno = 506 (0x1fa), region = 32  ;;  %s229_s18 = sand.u32 (!%p911_p11), 1, %s846_s19  }
  0x4a   : > { %s231_s8 = sand.u32 (!%p911_p11), 1, %s779_s16   ;;  %s230_s27 = scalar_lea.sflag (!%p911_p11), [#allocation3], %s229_s18 }
  0x4b   : > { %s527_s22 = sshll.u32 (!%p911_p11), %s231_s8, 3 }
  0x4c   : > { %s233_s24 = scalar_lea.vmem (!%p911_p11), [#allocation2], %s527_s22 }
  0x4e   : > { %750 = dma.done.wait (%p870_p6), %s230_s27, 128  }
  0x4f   : > { %752 = vsyncadd (%p870_p6), %s230_s27, 4294967168 }
  0x50   : > { %754 = dma.done.wait (%p38_p5), [#allocation5], 256  }
  0x51   : > { %756 = vsyncadd (%p38_p5), [#allocation5], 4294967040  ;;  %s246_s1 = sand.u32 1, %s767_s13  }
  0x52   : > { %s529_s21 = sshll.u32 %s246_s1, 3 }
  0x53   : > { %s248_s26 = scalar_lea.vmem [#allocation6], %s529_s21 }
  0x54   : > { %758 = dma.done.wait (%p938_p4), %s230_s27, 128  }
  0x55   : > { %760 = vsyncadd (%p938_p4), %s230_s27, 4294967168  ;;  %vm295_vm0 = vcmask 261120   ;;  %v312_v0 = vld [vmem:[#allocation4 + $0x8] sm:$0xff]  ;;  %v293_v1 = vld [vmem:[%s233_s24] sm:$0xff]  ;;  %vm401_vm13 = vcmask 130048   ;;  %p289_p5 = scmp.lt.s32.totalorder %s846_s19, 1 }
  0x56   : > { %v314_v2 = vmul.f32 %v312_v0, %v312_v0  ;;  %v294_v3 = vmul.f32 %v293_v1, %v293_v1  ;;  %v984_v4 = vld [vmem:[#allocation4] sm:$0xff]  ;;  %v986_v5 = vld [vmem:[%s248_s26] sm:$0xff]  ;;  %vm412_vm14 = vcmask 7168  }
  0x57   : > { %v313_v8 = vmul.f32 %v984_v4, %v984_v4  ;;  %v346_v9 = vmul.f32 %v986_v5, %v986_v5  ;;  %s1063_s19 = smov (!%p289_p5, %s846_s19), 1 }
  0x58   : > { %v318_v6 = vsel %vm295_vm0, %v314_v2, 0.0  ;;  %v296_v7 = vsel %vm295_vm0, %v294_v3, 0.0  ;;  %s530_s25 = sshll.u32 %s1063_s19, 3 }
  0x59   : > { %319 = vadd.xlane.f32.xlu0 %v318_v6  ;;  %297 = vadd.xlane.f32.xlu1 %v296_v7  ;;  %v315_v10 = vsel %vm295_vm0, %v313_v8, 0.0  ;;  %v347_v11 = vsel %vm295_vm0, %v346_v9, 0.0  ;;  %s292_s12 = scalar_lea.vmem %s1033_s3, %s530_s25 }
  0x61   : > { %316 = vadd.xlane.f32.xlu0 %v315_v10  ;;  %348 = vadd.xlane.f32.xlu1 %v347_v11 }
  0xcc   : > { %v320_v12 = vpop.xlane.xlu0 %319  ;;  %v298_v13 = vpop.xlane.xlu1 %297 }
  0xcd   : > { %v322_v14 = vmax.f32 %v320_v12, 1e-24  ;;  %v299_v15 = vmax.f32 %v298_v13, 1e-24 }
  0xcf   : > { %617 = vrsqrt.f32 %v322_v14  ;;  %vm306_vm2 = vweird.f32 %v299_v15  ;;  %vm339_vm4 = vweird.f32 %v322_v14 }
  0xd0   : > { %619 = vrsqrt.f32 %v299_v15 }
  0xd4   : > { %v317_v16 = vpop.xlane.xlu0 %316  ;;  %v349_v17 = vpop.xlane.xlu1 %348 }
  0xd5   : > { %v618_v18 = vpop.eup %617  ;;  %v321_v19 = vmax.f32 %v317_v16, 1e-24  ;;  %v350_v20 = vmax.f32 %v349_v17, 1e-24 }
  0xd6   : > { %v620_v21 = vpop.eup %619  ;;  %v334_v22 = vmul.f32 %v618_v18, %v322_v14  ;;  %vm340_vm1 = vweird.f32 %v618_v18 }
  0xd7   : > { %v301_v23 = vmul.f32 %v620_v21, %v299_v15  ;;  %621 = vrsqrt.f32 %v321_v19  ;;  %vm307_vm3 = vweird.f32 %v620_v21  ;;  %vm341_vm5 = vmor %vm339_vm4, %vm340_vm1  ;;  %vm357_vm7 = vweird.f32 %v350_v20 }
  0xd8   : > { %v335_v24 = vmul.f32 %v618_v18, %v334_v22  ;;  %623 = vrsqrt.f32 %v350_v20  ;;  %vm308_vm6 = vmor %vm306_vm2, %vm307_vm3  ;;  %vm329_vm10 = vweird.f32 %v321_v19 }
  0xd9   : > { %v302_v25 = vmul.f32 %v620_v21, %v301_v23 }
  0xda   : > { %v336_v26 = vmul.f32 0.5, %v335_v24 }
  0xdb   : > { %v303_v27 = vmul.f32 0.5, %v302_v25 }
  0xdc   : > { %v337_v28 = vsub.f32 1.5, %v336_v26 }
  0xdd   : > { %v622_v29 = vpop.eup %621  ;;  %v304_v30 = vsub.f32 1.5, %v303_v27 }
  0xde   : > { %v624_v31 = vpop.eup %623  ;;  %v324_v32 = vmul.f32 %v622_v29, %v321_v19  ;;  %v338_v33 = vmul.f32 %v618_v18, %v337_v28  ;;  %vm330_vm9 = vweird.f32 %v622_v29 }
  0xdf   : > { %v305_v34 = vmul.f32 %v620_v21, %v304_v30  ;;  %v352_v35 = vmul.f32 %v624_v31, %v350_v20  ;;  %vm358_vm8 = vweird.f32 %v624_v31  ;;  %vm331_vm12 = vmor %vm329_vm10, %vm330_vm9 }
  0xe0   : > { %v325_v36 = vmul.f32 %v622_v29, %v324_v32  ;;  %v342_v37 = vsel %vm341_vm5, %v618_v18, %v338_v33  ;;  %vm359_vm11 = vmor %vm357_vm7, %vm358_vm8 }
  0xe1   : > { %v353_v38 = vmul.f32 %v624_v31, %v352_v35  ;;  %v344_v39 = vmul.f32 %v342_v37, %v312_v0  ;;  %v309_v40 = vsel %vm308_vm6, %v620_v21, %v305_v34 }
  0xe2   : > { %v326_v41 = vmul.f32 0.5, %v325_v36  ;;  %v310_v42 = vmul.f32 %v309_v40, %v293_v1 }
  0xe3   : > { %v354_v43 = vmul.f32 0.5, %v353_v38  ;;  %531 = vmatpush.xpose.msk.msra.mxu0 %vm295_vm0, %v344_v39 }
  0xe4   : > { %v327_v44 = vsub.f32 1.5, %v326_v41  ;;  %v391_v45 = vmul.f32 %v310_v42, %v310_v42 }
  0xe5   : > { %v355_v46 = vsub.f32 1.5, %v354_v43 }
  0xe6   : > { %v392_v47 = vsel %vm295_vm0, %v391_v45, 0.0  ;;  %v328_v48 = vmul.f32 %v622_v29, %v327_v44 }
  0xe7   : > { %v356_v49 = vmul.f32 %v624_v31, %v355_v46  ;;  %393 = vadd.xlane.f32.xlu2 %v392_v47 }
  0xe8   : > { %v332_v50 = vsel %vm331_vm12, %v622_v29, %v328_v48 }
  0xe9   : > { %v343_v51 = vmul.f32 %v332_v50, %v984_v4  ;;  %v360_v52 = vsel %vm359_vm11, %v624_v31, %v356_v49 }
  0xea   : > { %v361_v53 = vmul.f32 %v360_v52, %v986_v5 }
  0xeb   : > { %532 = vmatpush.xpose.msk.msra.mxu0 %vm295_vm0, %v343_v51 }
  0xec   : > { %v395_v54 = vmul.f32 %v361_v53, %v310_v42 }
  0xee   : > { %533 = vmatmul.msk.f32.vlgmr.msra.gmra.mxu0 %vm295_vm0, %v310_v42  ;;  %v396_v55 = vsel %vm295_vm0, %v395_v54, 0.0 }
  0xef   : > { %397 = vadd.xlane.f32.xlu0 %v396_v55 }
 0x15a   : > { %v394_v60 = vpop.xlane.xlu2 %393 }
 0x15b   : > { %v405_v61 = vmul.f32 1.442695, %v394_v60 }
 0x162   : > { %v398_v4 = vpop.xlane.xlu0 %397 }
 0x16b   : > { %v388_v56 = vpop.f32.mrf.mxu0 }
 0x16c   : > { %v399_v57 = vmul.f32 1.442695, %v388_v56 }
 0x16e   : > { %625 = vpow2.f32 %v399_v57 }
 0x16f   : > { %627 = vpow2.f32 %v405_v61 }
 0x174   : > { %v626_v58 = vpop.eup %625 }
 0x175   : > { %v402_v59 = vsel %vm401_vm13, %v626_v58, 0.0  ;;  %v628_v62 = vpop.eup %627 }
 0x176   : > { %403 = vadd.xlane.f32.xlu2 %v402_v59 }
 0x1e9   : > { %v404_v63 = vpop.xlane.xlu2 %403 }
 0x1ea   : > { %v407_v0 = vsub.f32 %v404_v63, %v628_v62 }
 0x1ec   : > { %v408_v1 = vadd.f32 1e-08, %v407_v0 }
 0x1ee   : > { %629 = vlog2.f32 %v408_v1 }
 0x1f4   : > { %v630_v2 = vpop.eup %629 }
 0x1f5   : > { %v410_v3 = vmul.f32 0.6931472, %v630_v2 }
 0x1f7   : > { %v411_v5 = vsub.f32 %v410_v3, %v398_v4 }
 0x1f9   : > { %413 = vst.msk [vmem:[%s292_s12] sm:$0xff] %vm412_vm14, %v411_v5 }
 0x1fa PF: > { %p14_p6 = scmp.ge.s32.totalorder %s849_s20, 4   ;;  %s1047_s12 = smov %s767_s13 }
 0x1fb   : > { %s1048_s13 = smov %s771_s14  ;;  %s1049_s14 = smov %s946_s0 }
 0x1fc   : > { %s1050_s15 = smov %s779_s16  ;;  %s1051_s16 = smov %s783_s17 }
 0x1fd   : > { %s1052_s17 = smov %s859_s23  ;;  %s1053_s18 = smov %s849_s20 }
 0x1fe   :  { %16 = sbr.rel (!%p14_p6) target bundleno = 9 (0x9), region = 87 }
 0x203   :  { %433 = vsyncpa [#allocation3], 1 }
 0x204   :  { %435 = vsyncpa [#allocation3 + $0x1], 1 }
 0x205   :  { %436 = vsyncpa [#allocation5], 1 }

</bundles_post_ra>
